<compile_context>
chip_gen: v6e
topology: v6e:2x2x1
jax: 0.10.0
libtpu: 0.0.40
codegen_flags: <defaults>
</compile_context>

<pallas_src>
import jax
import jax.numpy as jnp
from jax import lax
from jax.experimental import pallas as pl
from jax.experimental.pallas import tpu as pltpu

NPAD = 128            # padded class count (lane aligned)
_NEG = -1e30          # finite mask sentinel (keep finite: -inf would NaN the exp/add paths)


def _make_kernel(C, n_classes):
    """Build the fused kernel for static channel count C and per-head class counts."""
    H = len(n_classes)

    def kernel(x_ref, g_ref, w1_ref, w2_ref, emb_ref, vec_ref, out_ref, xout_ref):
        x = x_ref[...]                                             # [bt, C] f32
        bt = x.shape[0]
        # hoisted head-invariant iota (JAX does not CSE broadcast_in_dim per iter)
        col = lax.broadcasted_iota(jnp.int32, (bt, NPAD), 1)

        for h in range(H):                                         # unrolled: H is small & static
            nc = int(n_classes[h])

            vec = vec_ref[h]                                       # [4, NPAD] f32 packed slab
            b1 = vec[0:1, :C]
            b2 = vec[1:2, :]
            gamma = vec[2:3, :C]
            beta = vec[3:4, :C]
            gum = g_ref[h]                                         # [bt, NPAD] f32 Gumbel noise

            # n = torch.norm(x, dim=-1) is computed but unused in the reference; skipped.

            # --- MLP: Linear(C,C) -> ReLU -> Linear(C,NPAD); bf16 weights, f32 accum ---
            hid = jnp.dot(x.astype(jnp.bfloat16), w1_ref[h],
                          preferred_element_type=jnp.float32) + b1
            hid = jnp.maximum(hid, 0.0)
            logits = jnp.dot(hid.astype(jnp.bfloat16), w2_ref[h],
                             preferred_element_type=jnp.float32) + b2

            valid = col < nc
            masked = jnp.where(valid, logits, _NEG)                # [bt, NPAD]

            # --- Categorical(logits): log-softmax / probs / entropy -----------------
            m = jnp.max(masked, axis=-1, keepdims=True)
            z = masked - m                                         # masked lanes ~ -1e30
            e = jnp.exp(z)                                         # underflows to 0 when masked
            s = jnp.sum(e, axis=-1, keepdims=True)                 # >= 1
            log_s = jnp.log(s)
            log_probs = z - log_s                                  # <= 0 everywhere
            probs = e / s
            ent = -jnp.sum(probs * log_probs, axis=-1, keepdims=True)   # [bt, 1]

            # --- sample ~ Categorical via Gumbel-max (noise supplied by caller) ------
            sample = jnp.argmax(masked + gum, axis=-1, keepdims=True).astype(jnp.int32)
            onehot = (col == sample).astype(jnp.float32)           # [bt, NPAD]
            logp = jnp.sum(onehot * log_probs, axis=-1, keepdims=True)  # [bt, 1]

            # --- embedding lookup (one-hot matmul) + LayerNorm + residual ------------
            emb = jnp.dot(onehot.astype(jnp.bfloat16), emb_ref[h],
                          preferred_element_type=jnp.float32)      # [bt, C]
            mu = jnp.mean(emb, axis=-1, keepdims=True)
            var = jnp.mean((emb - mu) ** 2, axis=-1, keepdims=True)
            ln = (emb - mu) * lax.rsqrt(var + 1e-5) * gamma + beta
            x = x + ln

            # --- fused lane-dense output slab ----------------------------------------
            # lanes [0, NPAD): masked logits; lane NPAD+0/1/2: sample / log_prob / entropy
            stats = jnp.where(col == 0, sample.astype(jnp.float32),
                    jnp.where(col == 1, logp,
                    jnp.where(col == 2, ent, 0.0)))
            out_ref[h, :, :NPAD] = masked
            out_ref[h, :, NPAD:] = stats

        xout_ref[...] = x

    return kernel


def dict_auto_decoder_forward(x, params, n_classes, gumbel):
    """Fused forward over all heads.

    Returns:
      out_slab: [H, B, 2*NPAD] f32 (logits | sample/log_prob/entropy lanes)
      x_out:    [B, C] f32 updated latent
    """
    B, C = x.shape
    H = len(n_classes)
    assert B % 8 == 0, "batch must be a multiple of 8 (sublane granularity)"

    # Batch-tile grid axis ("parallel"): splits rows across TensorCores on v7x
    # for large B; for small B it degenerates to a single grid step.
    bt = 128 if (B > 128 and B % 128 == 0) else B
    grid = (B // bt,)

    kernel = _make_kernel(C, tuple(int(n) for n in n_classes))

    in_specs = [
        pl.BlockSpec((bt, C), lambda b: (b, 0)),              # x (batch tile)
        pl.BlockSpec((H, bt, NPAD), lambda b: (0, b, 0)),     # gumbel noise
        pl.BlockSpec((H, C, C), lambda b: (0, 0, 0)),         # w1 (bf16, all heads)
        pl.BlockSpec((H, C, NPAD), lambda b: (0, 0, 0)),      # w2 (bf16, all heads)
        pl.BlockSpec((H, NPAD, C), lambda b: (0, 0, 0)),      # embedding tables (bf16)
        pl.BlockSpec((H, 4, NPAD), lambda b: (0, 0, 0)),      # packed b1/b2/gamma/beta
    ]
    out_specs = (
        pl.BlockSpec((H, bt, 2 * NPAD), lambda b: (0, b, 0)),  # fused logits+stats slab
        pl.BlockSpec((bt, C), lambda b: (b, 0)),               # x_out
    )
    out_shape = (
        jax.ShapeDtypeStruct((H, B, 2 * NPAD), jnp.float32),
        jax.ShapeDtypeStruct((B, C), jnp.float32),
    )

    return pl.pallas_call(
        kernel,
        grid=grid,
        in_specs=in_specs,
        out_specs=out_specs,
        out_shape=out_shape,
        compiler_params=pltpu.CompilerParams(
            dimension_semantics=("parallel",)),
    )(x, gumbel, params["w1"], params["w2"], params["emb"], params["vec"])


def init_head_params(key, channels, n):
    """One head's parameters; matmul weights stored bf16, vectors packed into one f32 slab."""
    C = channels
    k1, k2, k3 = jax.random.split(key, 3)
    w1 = (jax.random.normal(k1, (C, C), jnp.float32) / jnp.sqrt(C)).astype(jnp.bfloat16)
    w2 = jnp.zeros((C, NPAD), jnp.float32)
    w2 = w2.at[:, :n].set(jax.random.normal(k2, (C, n), jnp.float32) / jnp.sqrt(C))
    w2 = w2.astype(jnp.bfloat16)
    emb = jnp.zeros((NPAD, C), jnp.float32)
    emb = emb.at[:n].set(jax.random.normal(k3, (n, C), jnp.float32))
    emb = emb.astype(jnp.bfloat16)
    # packed slab: row0=b1, row1=b2, row2=LayerNorm gamma, row3=LayerNorm beta
    vec = jnp.zeros((4, NPAD), jnp.float32)
    vec = vec.at[2, :C].set(1.0)          # gamma = ones
    return dict(w1=w1, w2=w2, emb=emb, vec=vec)


class DictAutoDecoderPallas:
    """DictAutoDecoder: Dict space of Discrete subspaces, all heads fused in one kernel."""

    def __init__(self, channels, space, key):
        self.channels = channels
        self.space = dict(space)  # {name: n_classes}
        self.names = list(self.space.keys())
        self.n_list = [int(self.space[name]) for name in self.names]
        keys = jax.random.split(key, len(self.names))
        per_head = [init_head_params(k, channels, n)
                    for k, n in zip(keys, self.n_list)]
        # stack per-head params along a leading head axis [H, ...]
        self.params = {k: jnp.stack([p[k] for p in per_head], axis=0)
                       for k in per_head[0]}

    def __call__(self, x, key):
        B, C = x.shape
        H = len(self.names)
        # host-side Gumbel noise (interpret-safe, independent across heads & rows)
        gumbel = jax.random.gumbel(key, (H, B, NPAD), jnp.float32)
        out_slab, x_out = dict_auto_decoder_forward(
            x, self.params, self.n_list, gumbel)
        out = {}
        for i, name in enumerate(self.names):
            n = self.space[name]
            out[name] = dict(
                sample=out_slab[i, :, NPAD].astype(jnp.int32),   # exact for n < 2^24
                log_prob=out_slab[i, :, NPAD + 1],
                entropy=out_slab[i, :, NPAD + 2],
                logits=out_slab[i, :, :n],
            )
        return out, x_out


if __name__ == "__main__":
    B = 8          # batch
    C = 32         # config.channels
    # Dict action space: name -> Discrete(n)
    space = {"mode": 6, "color": 7, "shape": 12}

    root = jax.random.PRNGKey(0)
    k_param, k_x, k_sample = jax.random.split(root, 3)

    decoder = DictAutoDecoderPallas(C, space, k_param)
    x = jax.random.normal(k_x, (B, C), jnp.float32)

    out, x_out = decoder(x, k_sample)
    jax.block_until_ready(x_out)
    for name in space:
        jax.block_until_ready(out[name]["logits"])

    # light sanity checks
    assert x_out.shape == (B, C)
    assert bool(jnp.all(jnp.isfinite(x_out)))
    for name, n in space.items():
        assert out[name]["sample"].shape == (B,)
        assert out[name]["log_prob"].shape == (B,)
        assert out[name]["entropy"].shape == (B,)
        assert out[name]["logits"].shape == (B, n)
        assert int(jnp.min(out[name]["sample"])) >= 0
        assert int(jnp.max(out[name]["sample"])) < n
        assert bool(jnp.all(out[name]["log_prob"] <= 0.0))
        assert bool(jnp.all(out[name]["entropy"] >= 0.0))
        assert bool(jnp.all(jnp.isfinite(out[name]["logits"])))

    print("KERNEL_OK")
</pallas_src>

<mosaic_0001>
module attributes {stable_mosaic.version = 11 : i64} {
  func.func @kernel(%arg0: i32, %arg1: memref<8x32xf32, #tpu.memory_space<vmem>>, %arg2: memref<3x8x128xf32, #tpu.memory_space<vmem>>, %arg3: memref<3x32x32xbf16, #tpu.memory_space<vmem>>, %arg4: memref<3x32x128xbf16, #tpu.memory_space<vmem>>, %arg5: memref<3x128x32xbf16, #tpu.memory_space<vmem>>, %arg6: memref<3x4x128xf32, #tpu.memory_space<vmem>>, %arg7: memref<3x8x256xf32, #tpu.memory_space<vmem>>, %arg8: memref<8x32xf32, #tpu.memory_space<vmem>>) attributes {dimension_semantics = [#tpu.dimension_semantics<parallel>], iteration_bounds = array<i64: 1>, scalar_prefetch = 0 : i64, scratch_operands = 0 : i64, tpu.core_type = #tpu.core_type<tc>, window_params = [{transform_indices = @transform_0, window_bounds = array<i64: 8, 32>}, {transform_indices = @transform_1, window_bounds = array<i64: 3, 8, 128>}, {pipeline_mode = #tpu.pipeline_mode<synchronous>, transform_indices = @transform_2, window_bounds = array<i64: 3, 32, 32>}, {pipeline_mode = #tpu.pipeline_mode<synchronous>, transform_indices = @transform_3, window_bounds = array<i64: 3, 32, 128>}, {pipeline_mode = #tpu.pipeline_mode<synchronous>, transform_indices = @transform_4, window_bounds = array<i64: 3, 128, 32>}, {pipeline_mode = #tpu.pipeline_mode<synchronous>, transform_indices = @transform_5, window_bounds = array<i64: 3, 4, 128>}, {transform_indices = @transform_6, window_bounds = array<i64: 3, 8, 256>}, {transform_indices = @transform_7, window_bounds = array<i64: 8, 32>}]} {
    %c0 = arith.constant 0 : index
    %c0_0 = arith.constant 0 : index
    %0 = vector.load %arg1[%c0, %c0_0] : memref<8x32xf32, #tpu.memory_space<vmem>>, vector<8x32xf32>
    %1 = tpu.iota {dimensions = array<i32: 1>} : vector<8x128xi32>
    %c0_1 = arith.constant 0 : index
    %c0_2 = arith.constant 0 : index
    %c0_3 = arith.constant 0 : index
    %2 = vector.load %arg6[%c0_1, %c0_2, %c0_3] : memref<3x4x128xf32, #tpu.memory_space<vmem>>, vector<1x4x128xf32>
    %3 = vector.shape_cast %2 : vector<1x4x128xf32> to vector<4x128xf32>
    %4 = vector.extract_strided_slice %3 {offsets = [0, 0], sizes = [1, 32], strides = [1, 1]} : vector<4x128xf32> to vector<1x32xf32>
    %5 = vector.extract_strided_slice %3 {offsets = [1, 0], sizes = [1, 128], strides = [1, 1]} : vector<4x128xf32> to vector<1x128xf32>
    %6 = vector.extract_strided_slice %3 {offsets = [2, 0], sizes = [1, 32], strides = [1, 1]} : vector<4x128xf32> to vector<1x32xf32>
    %7 = vector.extract_strided_slice %3 {offsets = [3, 0], sizes = [1, 32], strides = [1, 1]} : vector<4x128xf32> to vector<1x32xf32>
    %c0_4 = arith.constant 0 : index
    %c0_5 = arith.constant 0 : index
    %c0_6 = arith.constant 0 : index
    %8 = vector.load %arg2[%c0_4, %c0_5, %c0_6] : memref<3x8x128xf32, #tpu.memory_space<vmem>>, vector<1x8x128xf32>
    %9 = vector.shape_cast %8 : vector<1x8x128xf32> to vector<8x128xf32>
    %10 = arith.truncf %0 : vector<8x32xf32> to vector<8x32xbf16>
    %c0_7 = arith.constant 0 : index
    %c0_8 = arith.constant 0 : index
    %c0_9 = arith.constant 0 : index
    %11 = vector.load %arg3[%c0_7, %c0_8, %c0_9] : memref<3x32x32xbf16, #tpu.memory_space<vmem>>, vector<1x32x32xbf16>
    %12 = vector.shape_cast %11 : vector<1x32x32xbf16> to vector<32x32xbf16>
    %cst = arith.constant dense<0.000000e+00> : vector<8x32xf32>
    %13 = tpu.matmul %10, %12, %cst {dimension_numbers = #tpu.dot_dimension_numbers<[1], [0], [0], [1], [0, 0, 1, 1], [], []>} : vector<8x32xbf16>, vector<32x32xbf16>, vector<8x32xf32> -> vector<8x32xf32>
    %14 = vector.broadcast %4 : vector<1x32xf32> to vector<8x32xf32>
    %15 = arith.addf %13, %14 : vector<8x32xf32>
    %cst_10 = arith.constant 0.000000e+00 : f32
    %16 = vector.broadcast %cst_10 : f32 to vector<8x32xf32>
    %17 = arith.maximumf %15, %16 : vector<8x32xf32>
    %18 = arith.truncf %17 : vector<8x32xf32> to vector<8x32xbf16>
    %c0_11 = arith.constant 0 : index
    %c0_12 = arith.constant 0 : index
    %c0_13 = arith.constant 0 : index
    %19 = vector.load %arg4[%c0_11, %c0_12, %c0_13] : memref<3x32x128xbf16, #tpu.memory_space<vmem>>, vector<1x32x128xbf16>
    %20 = vector.shape_cast %19 : vector<1x32x128xbf16> to vector<32x128xbf16>
    %cst_14 = arith.constant dense<0.000000e+00> : vector<8x128xf32>
    %21 = tpu.matmul %18, %20, %cst_14 {dimension_numbers = #tpu.dot_dimension_numbers<[1], [0], [0], [1], [0, 0, 1, 1], [], []>} : vector<8x32xbf16>, vector<32x128xbf16>, vector<8x128xf32> -> vector<8x128xf32>
    %22 = vector.broadcast %5 : vector<1x128xf32> to vector<8x128xf32>
    %23 = arith.addf %21, %22 : vector<8x128xf32>
    %c6_i32 = arith.constant 6 : i32
    %24 = vector.broadcast %c6_i32 : i32 to vector<8x128xi32>
    %25 = arith.cmpi slt, %1, %24 : vector<8x128xi32>
    %cst_15 = arith.constant -1.000000e+30 : f32
    %26 = vector.broadcast %cst_15 : f32 to vector<8x128xf32>
    %27 = arith.select %25, %23, %26 : vector<8x128xi1>, vector<8x128xf32>
    %cst_16 = arith.constant dense<0xFF800000> : vector<8xf32>
    %28 = vector.multi_reduction <maximumf>, %27, %cst_16 [1] : vector<8x128xf32> to vector<8xf32>
    %29 = vector.shape_cast %28 : vector<8xf32> to vector<8x1xf32>
    %30 = vector.broadcast %29 : vector<8x1xf32> to vector<8x128xf32>
    %31 = arith.subf %27, %30 : vector<8x128xf32>
    %32 = math.exp %31 : vector<8x128xf32>
    %cst_17 = arith.constant dense<0.000000e+00> : vector<8xf32>
    %33 = vector.multi_reduction <add>, %32, %cst_17 [1] : vector<8x128xf32> to vector<8xf32>
    %34 = vector.shape_cast %33 : vector<8xf32> to vector<8x1xf32>
    %35 = math.log %34 : vector<8x1xf32>
    %36 = vector.broadcast %35 : vector<8x1xf32> to vector<8x128xf32>
    %37 = arith.subf %31, %36 : vector<8x128xf32>
    %38 = vector.broadcast %34 : vector<8x1xf32> to vector<8x128xf32>
    %39 = arith.divf %32, %38 : vector<8x128xf32>
    %40 = arith.mulf %39, %37 : vector<8x128xf32>
    %cst_18 = arith.constant dense<0.000000e+00> : vector<8xf32>
    %41 = vector.multi_reduction <add>, %40, %cst_18 [1] : vector<8x128xf32> to vector<8xf32>
    %42 = vector.shape_cast %41 : vector<8xf32> to vector<8x1xf32>
    %cst_19 = arith.constant 0.000000e+00 : f32
    %43 = vector.broadcast %cst_19 : f32 to vector<8x1xf32>
    %44 = arith.subf %43, %42 : vector<8x1xf32>
    %45 = arith.addf %27, %9 : vector<8x128xf32>
    %46 = tpu.reduce_index %45 {axis = 1 : i32, kind = #tpu.reduction_kind<arg_max>} : vector<8x128xf32> -> vector<8xi32>
    %47 = vector.shape_cast %46 : vector<8xi32> to vector<8x1xi32>
    %48 = vector.broadcast %47 : vector<8x1xi32> to vector<8x128xi32>
    %49 = arith.cmpi eq, %1, %48 : vector<8x128xi32>
    %50 = arith.extui %49 : vector<8x128xi1> to vector<8x128xi32>
    %51 = arith.sitofp %50 : vector<8x128xi32> to vector<8x128xf32>
    %52 = arith.mulf %51, %37 : vector<8x128xf32>
    %cst_20 = arith.constant dense<0.000000e+00> : vector<8xf32>
    %53 = vector.multi_reduction <add>, %52, %cst_20 [1] : vector<8x128xf32> to vector<8xf32>
    %54 = vector.shape_cast %53 : vector<8xf32> to vector<8x1xf32>
    %55 = arith.truncf %51 : vector<8x128xf32> to vector<8x128xbf16>
    %c0_21 = arith.constant 0 : index
    %c0_22 = arith.constant 0 : index
    %c0_23 = arith.constant 0 : index
    %56 = vector.load %arg5[%c0_21, %c0_22, %c0_23] : memref<3x128x32xbf16, #tpu.memory_space<vmem>>, vector<1x128x32xbf16>
    %57 = vector.shape_cast %56 : vector<1x128x32xbf16> to vector<128x32xbf16>
    %cst_24 = arith.constant dense<0.000000e+00> : vector<8x32xf32>
    %58 = tpu.matmul %55, %57, %cst_24 {dimension_numbers = #tpu.dot_dimension_numbers<[1], [0], [0], [1], [0, 0, 1, 1], [], []>} : vector<8x128xbf16>, vector<128x32xbf16>, vector<8x32xf32> -> vector<8x32xf32>
    %cst_25 = arith.constant dense<0.000000e+00> : vector<8xf32>
    %59 = vector.multi_reduction <add>, %58, %cst_25 [1] : vector<8x32xf32> to vector<8xf32>
    %60 = vector.shape_cast %59 : vector<8xf32> to vector<8x1xf32>
    %cst_26 = arith.constant 3.200000e+01 : f32
    %61 = vector.broadcast %cst_26 : f32 to vector<8x1xf32>
    %62 = arith.divf %60, %61 : vector<8x1xf32>
    %63 = vector.broadcast %62 : vector<8x1xf32> to vector<8x32xf32>
    %64 = arith.subf %58, %63 : vector<8x32xf32>
    %65 = arith.mulf %64, %64 : vector<8x32xf32>
    %cst_27 = arith.constant dense<0.000000e+00> : vector<8xf32>
    %66 = vector.multi_reduction <add>, %65, %cst_27 [1] : vector<8x32xf32> to vector<8xf32>
    %67 = vector.shape_cast %66 : vector<8xf32> to vector<8x1xf32>
    %cst_28 = arith.constant 3.200000e+01 : f32
    %68 = vector.broadcast %cst_28 : f32 to vector<8x1xf32>
    %69 = arith.divf %67, %68 : vector<8x1xf32>
    %70 = vector.broadcast %62 : vector<8x1xf32> to vector<8x32xf32>
    %71 = arith.subf %58, %70 : vector<8x32xf32>
    %cst_29 = arith.constant 9.99999974E-6 : f32
    %72 = vector.broadcast %cst_29 : f32 to vector<8x1xf32>
    %73 = arith.addf %69, %72 : vector<8x1xf32>
    %74 = math.rsqrt %73 : vector<8x1xf32>
    %75 = vector.broadcast %74 : vector<8x1xf32> to vector<8x32xf32>
    %76 = arith.mulf %71, %75 : vector<8x32xf32>
    %77 = vector.broadcast %6 : vector<1x32xf32> to vector<8x32xf32>
    %78 = arith.mulf %76, %77 : vector<8x32xf32>
    %79 = vector.broadcast %7 : vector<1x32xf32> to vector<8x32xf32>
    %80 = arith.addf %78, %79 : vector<8x32xf32>
    %81 = arith.addf %0, %80 : vector<8x32xf32>
    %c0_i32 = arith.constant 0 : i32
    %82 = vector.broadcast %c0_i32 : i32 to vector<8x128xi32>
    %83 = arith.cmpi eq, %1, %82 : vector<8x128xi32>
    %84 = arith.sitofp %47 : vector<8x1xi32> to vector<8x1xf32>
    %c1_i32 = arith.constant 1 : i32
    %85 = vector.broadcast %c1_i32 : i32 to vector<8x128xi32>
    %86 = arith.cmpi eq, %1, %85 : vector<8x128xi32>
    %c2_i32 = arith.constant 2 : i32
    %87 = vector.broadcast %c2_i32 : i32 to vector<8x128xi32>
    %88 = arith.cmpi eq, %1, %87 : vector<8x128xi32>
    %cst_30 = arith.constant 0.000000e+00 : f32
    %89 = vector.shape_cast %44 : vector<8x1xf32> to vector<8x1xf32>
    %90 = vector.broadcast %89 : vector<8x1xf32> to vector<8x128xf32>
    %91 = vector.broadcast %cst_30 : f32 to vector<8x128xf32>
    %92 = arith.select %88, %90, %91 : vector<8x128xi1>, vector<8x128xf32>
    %93 = vector.shape_cast %54 : vector<8x1xf32> to vector<8x1xf32>
    %94 = vector.broadcast %93 : vector<8x1xf32> to vector<8x128xf32>
    %95 = arith.select %86, %94, %92 : vector<8x128xi1>, vector<8x128xf32>
    %96 = vector.shape_cast %84 : vector<8x1xf32> to vector<8x1xf32>
    %97 = vector.broadcast %96 : vector<8x1xf32> to vector<8x128xf32>
    %98 = arith.select %83, %97, %95 : vector<8x128xi1>, vector<8x128xf32>
    %c0_31 = arith.constant 0 : index
    %c0_32 = arith.constant 0 : index
    %c0_33 = arith.constant 0 : index
    %99 = vector.load %arg7[%c0_31, %c0_32, %c0_33] : memref<3x8x256xf32, #tpu.memory_space<vmem>>, vector<1x8x128xf32>
    %100 = vector.shape_cast %99 : vector<1x8x128xf32> to vector<8x128xf32>
    %101 = vector.shape_cast %27 : vector<8x128xf32> to vector<1x8x128xf32>
    tpu.vector_store %arg7[%c0_31, %c0_32, %c0_33], %101 {strides = array<i32>} : memref<3x8x256xf32, #tpu.memory_space<vmem>>, vector<1x8x128xf32>,
    %c0_34 = arith.constant 0 : index
    %c0_35 = arith.constant 0 : index
    %c128 = arith.constant 128 : index
    %102 = vector.load %arg7[%c0_34, %c0_35, %c128] : memref<3x8x256xf32, #tpu.memory_space<vmem>>, vector<1x8x128xf32>
    %103 = vector.shape_cast %102 : vector<1x8x128xf32> to vector<8x128xf32>
    %104 = vector.shape_cast %98 : vector<8x128xf32> to vector<1x8x128xf32>
    tpu.vector_store %arg7[%c0_34, %c0_35, %c128], %104 {strides = array<i32>} : memref<3x8x256xf32, #tpu.memory_space<vmem>>, vector<1x8x128xf32>,
    %c1 = arith.constant 1 : index
    %c0_36 = arith.constant 0 : index
    %c0_37 = arith.constant 0 : index
    %105 = vector.load %arg6[%c1, %c0_36, %c0_37] : memref<3x4x128xf32, #tpu.memory_space<vmem>>, vector<1x4x128xf32>
    %106 = vector.shape_cast %105 : vector<1x4x128xf32> to vector<4x128xf32>
    %107 = vector.extract_strided_slice %106 {offsets = [0, 0], sizes = [1, 32], strides = [1, 1]} : vector<4x128xf32> to vector<1x32xf32>
    %108 = vector.extract_strided_slice %106 {offsets = [1, 0], sizes = [1, 128], strides = [1, 1]} : vector<4x128xf32> to vector<1x128xf32>
    %109 = vector.extract_strided_slice %106 {offsets = [2, 0], sizes = [1, 32], strides = [1, 1]} : vector<4x128xf32> to vector<1x32xf32>
    %110 = vector.extract_strided_slice %106 {offsets = [3, 0], sizes = [1, 32], strides = [1, 1]} : vector<4x128xf32> to vector<1x32xf32>
    %c1_38 = arith.constant 1 : index
    %c0_39 = arith.constant 0 : index
    %c0_40 = arith.constant 0 : index
    %111 = vector.load %arg2[%c1_38, %c0_39, %c0_40] : memref<3x8x128xf32, #tpu.memory_space<vmem>>, vector<1x8x128xf32>
    %112 = vector.shape_cast %111 : vector<1x8x128xf32> to vector<8x128xf32>
    %113 = arith.truncf %81 : vector<8x32xf32> to vector<8x32xbf16>
    %c1_41 = arith.constant 1 : index
    %c0_42 = arith.constant 0 : index
    %c0_43 = arith.constant 0 : index
    %114 = vector.load %arg3[%c1_41, %c0_42, %c0_43] : memref<3x32x32xbf16, #tpu.memory_space<vmem>>, vector<1x32x32xbf16>
    %115 = vector.shape_cast %114 : vector<1x32x32xbf16> to vector<32x32xbf16>
    %cst_44 = arith.constant dense<0.000000e+00> : vector<8x32xf32>
    %116 = tpu.matmul %113, %115, %cst_44 {dimension_numbers = #tpu.dot_dimension_numbers<[1], [0], [0], [1], [0, 0, 1, 1], [], []>} : vector<8x32xbf16>, vector<32x32xbf16>, vector<8x32xf32> -> vector<8x32xf32>
    %117 = vector.broadcast %107 : vector<1x32xf32> to vector<8x32xf32>
    %118 = arith.addf %116, %117 : vector<8x32xf32>
    %cst_45 = arith.constant 0.000000e+00 : f32
    %119 = vector.broadcast %cst_45 : f32 to vector<8x32xf32>
    %120 = arith.maximumf %118, %119 : vector<8x32xf32>
    %121 = arith.truncf %120 : vector<8x32xf32> to vector<8x32xbf16>
    %c1_46 = arith.constant 1 : index
    %c0_47 = arith.constant 0 : index
    %c0_48 = arith.constant 0 : index
    %122 = vector.load %arg4[%c1_46, %c0_47, %c0_48] : memref<3x32x128xbf16, #tpu.memory_space<vmem>>, vector<1x32x128xbf16>
    %123 = vector.shape_cast %122 : vector<1x32x128xbf16> to vector<32x128xbf16>
    %cst_49 = arith.constant dense<0.000000e+00> : vector<8x128xf32>
    %124 = tpu.matmul %121, %123, %cst_49 {dimension_numbers = #tpu.dot_dimension_numbers<[1], [0], [0], [1], [0, 0, 1, 1], [], []>} : vector<8x32xbf16>, vector<32x128xbf16>, vector<8x128xf32> -> vector<8x128xf32>
    %125 = vector.broadcast %108 : vector<1x128xf32> to vector<8x128xf32>
    %126 = arith.addf %124, %125 : vector<8x128xf32>
    %c7_i32 = arith.constant 7 : i32
    %127 = vector.broadcast %c7_i32 : i32 to vector<8x128xi32>
    %128 = arith.cmpi slt, %1, %127 : vector<8x128xi32>
    %cst_50 = arith.constant -1.000000e+30 : f32
    %129 = vector.broadcast %cst_50 : f32 to vector<8x128xf32>
    %130 = arith.select %128, %126, %129 : vector<8x128xi1>, vector<8x128xf32>
    %cst_51 = arith.constant dense<0xFF800000> : vector<8xf32>
    %131 = vector.multi_reduction <maximumf>, %130, %cst_51 [1] : vector<8x128xf32> to vector<8xf32>
    %132 = vector.shape_cast %131 : vector<8xf32> to vector<8x1xf32>
    %133 = vector.broadcast %132 : vector<8x1xf32> to vector<8x128xf32>
    %134 = arith.subf %130, %133 : vector<8x128xf32>
    %135 = math.exp %134 : vector<8x128xf32>
    %cst_52 = arith.constant dense<0.000000e+00> : vector<8xf32>
    %136 = vector.multi_reduction <add>, %135, %cst_52 [1] : vector<8x128xf32> to vector<8xf32>
    %137 = vector.shape_cast %136 : vector<8xf32> to vector<8x1xf32>
    %138 = math.log %137 : vector<8x1xf32>
    %139 = vector.broadcast %138 : vector<8x1xf32> to vector<8x128xf32>
    %140 = arith.subf %134, %139 : vector<8x128xf32>
    %141 = vector.broadcast %137 : vector<8x1xf32> to vector<8x128xf32>
    %142 = arith.divf %135, %141 : vector<8x128xf32>
    %143 = arith.mulf %142, %140 : vector<8x128xf32>
    %cst_53 = arith.constant dense<0.000000e+00> : vector<8xf32>
    %144 = vector.multi_reduction <add>, %143, %cst_53 [1] : vector<8x128xf32> to vector<8xf32>
    %145 = vector.shape_cast %144 : vector<8xf32> to vector<8x1xf32>
    %cst_54 = arith.constant 0.000000e+00 : f32
    %146 = vector.broadcast %cst_54 : f32 to vector<8x1xf32>
    %147 = arith.subf %146, %145 : vector<8x1xf32>
    %148 = arith.addf %130, %112 : vector<8x128xf32>
    %149 = tpu.reduce_index %148 {axis = 1 : i32, kind = #tpu.reduction_kind<arg_max>} : vector<8x128xf32> -> vector<8xi32>
    %150 = vector.shape_cast %149 : vector<8xi32> to vector<8x1xi32>
    %151 = vector.broadcast %150 : vector<8x1xi32> to vector<8x128xi32>
    %152 = arith.cmpi eq, %1, %151 : vector<8x128xi32>
    %153 = arith.extui %152 : vector<8x128xi1> to vector<8x128xi32>
    %154 = arith.sitofp %153 : vector<8x128xi32> to vector<8x128xf32>
    %155 = arith.mulf %154, %140 : vector<8x128xf32>
    %cst_55 = arith.constant dense<0.000000e+00> : vector<8xf32>
    %156 = vector.multi_reduction <add>, %155, %cst_55 [1] : vector<8x128xf32> to vector<8xf32>
    %157 = vector.shape_cast %156 : vector<8xf32> to vector<8x1xf32>
    %158 = arith.truncf %154 : vector<8x128xf32> to vector<8x128xbf16>
    %c1_56 = arith.constant 1 : index
    %c0_57 = arith.constant 0 : index
    %c0_58 = arith.constant 0 : index
    %159 = vector.load %arg5[%c1_56, %c0_57, %c0_58] : memref<3x128x32xbf16, #tpu.memory_space<vmem>>, vector<1x128x32xbf16>
    %160 = vector.shape_cast %159 : vector<1x128x32xbf16> to vector<128x32xbf16>
    %cst_59 = arith.constant dense<0.000000e+00> : vector<8x32xf32>
    %161 = tpu.matmul %158, %160, %cst_59 {dimension_numbers = #tpu.dot_dimension_numbers<[1], [0], [0], [1], [0, 0, 1, 1], [], []>} : vector<8x128xbf16>, vector<128x32xbf16>, vector<8x32xf32> -> vector<8x32xf32>
    %cst_60 = arith.constant dense<0.000000e+00> : vector<8xf32>
    %162 = vector.multi_reduction <add>, %161, %cst_60 [1] : vector<8x32xf32> to vector<8xf32>
    %163 = vector.shape_cast %162 : vector<8xf32> to vector<8x1xf32>
    %cst_61 = arith.constant 3.200000e+01 : f32
    %164 = vector.broadcast %cst_61 : f32 to vector<8x1xf32>
    %165 = arith.divf %163, %164 : vector<8x1xf32>
    %166 = vector.broadcast %165 : vector<8x1xf32> to vector<8x32xf32>
    %167 = arith.subf %161, %166 : vector<8x32xf32>
    %168 = arith.mulf %167, %167 : vector<8x32xf32>
    %cst_62 = arith.constant dense<0.000000e+00> : vector<8xf32>
    %169 = vector.multi_reduction <add>, %168, %cst_62 [1] : vector<8x32xf32> to vector<8xf32>
    %170 = vector.shape_cast %169 : vector<8xf32> to vector<8x1xf32>
    %cst_63 = arith.constant 3.200000e+01 : f32
    %171 = vector.broadcast %cst_63 : f32 to vector<8x1xf32>
    %172 = arith.divf %170, %171 : vector<8x1xf32>
    %173 = vector.broadcast %165 : vector<8x1xf32> to vector<8x32xf32>
    %174 = arith.subf %161, %173 : vector<8x32xf32>
    %cst_64 = arith.constant 9.99999974E-6 : f32
    %175 = vector.broadcast %cst_64 : f32 to vector<8x1xf32>
    %176 = arith.addf %172, %175 : vector<8x1xf32>
    %177 = math.rsqrt %176 : vector<8x1xf32>
    %178 = vector.broadcast %177 : vector<8x1xf32> to vector<8x32xf32>
    %179 = arith.mulf %174, %178 : vector<8x32xf32>
    %180 = vector.broadcast %109 : vector<1x32xf32> to vector<8x32xf32>
    %181 = arith.mulf %179, %180 : vector<8x32xf32>
    %182 = vector.broadcast %110 : vector<1x32xf32> to vector<8x32xf32>
    %183 = arith.addf %181, %182 : vector<8x32xf32>
    %184 = arith.addf %81, %183 : vector<8x32xf32>
    %c0_i32_65 = arith.constant 0 : i32
    %185 = vector.broadcast %c0_i32_65 : i32 to vector<8x128xi32>
    %186 = arith.cmpi eq, %1, %185 : vector<8x128xi32>
    %187 = arith.sitofp %150 : vector<8x1xi32> to vector<8x1xf32>
    %c1_i32_66 = arith.constant 1 : i32
    %188 = vector.broadcast %c1_i32_66 : i32 to vector<8x128xi32>
    %189 = arith.cmpi eq, %1, %188 : vector<8x128xi32>
    %c2_i32_67 = arith.constant 2 : i32
    %190 = vector.broadcast %c2_i32_67 : i32 to vector<8x128xi32>
    %191 = arith.cmpi eq, %1, %190 : vector<8x128xi32>
    %cst_68 = arith.constant 0.000000e+00 : f32
    %192 = vector.shape_cast %147 : vector<8x1xf32> to vector<8x1xf32>
    %193 = vector.broadcast %192 : vector<8x1xf32> to vector<8x128xf32>
    %194 = vector.broadcast %cst_68 : f32 to vector<8x128xf32>
    %195 = arith.select %191, %193, %194 : vector<8x128xi1>, vector<8x128xf32>
    %196 = vector.shape_cast %157 : vector<8x1xf32> to vector<8x1xf32>
    %197 = vector.broadcast %196 : vector<8x1xf32> to vector<8x128xf32>
    %198 = arith.select %189, %197, %195 : vector<8x128xi1>, vector<8x128xf32>
    %199 = vector.shape_cast %187 : vector<8x1xf32> to vector<8x1xf32>
    %200 = vector.broadcast %199 : vector<8x1xf32> to vector<8x128xf32>
    %201 = arith.select %186, %200, %198 : vector<8x128xi1>, vector<8x128xf32>
    %c1_69 = arith.constant 1 : index
    %c0_70 = arith.constant 0 : index
    %c0_71 = arith.constant 0 : index
    %202 = vector.load %arg7[%c1_69, %c0_70, %c0_71] : memref<3x8x256xf32, #tpu.memory_space<vmem>>, vector<1x8x128xf32>
    %203 = vector.shape_cast %202 : vector<1x8x128xf32> to vector<8x128xf32>
    %204 = vector.shape_cast %130 : vector<8x128xf32> to vector<1x8x128xf32>
    tpu.vector_store %arg7[%c1_69, %c0_70, %c0_71], %204 {strides = array<i32>} : memref<3x8x256xf32, #tpu.memory_space<vmem>>, vector<1x8x128xf32>,
    %c1_72 = arith.constant 1 : index
    %c0_73 = arith.constant 0 : index
    %c128_74 = arith.constant 128 : index
    %205 = vector.load %arg7[%c1_72, %c0_73, %c128_74] : memref<3x8x256xf32, #tpu.memory_space<vmem>>, vector<1x8x128xf32>
    %206 = vector.shape_cast %205 : vector<1x8x128xf32> to vector<8x128xf32>
    %207 = vector.shape_cast %201 : vector<8x128xf32> to vector<1x8x128xf32>
    tpu.vector_store %arg7[%c1_72, %c0_73, %c128_74], %207 {strides = array<i32>} : memref<3x8x256xf32, #tpu.memory_space<vmem>>, vector<1x8x128xf32>,
    %c2 = arith.constant 2 : index
    %c0_75 = arith.constant 0 : index
    %c0_76 = arith.constant 0 : index
    %208 = vector.load %arg6[%c2, %c0_75, %c0_76] : memref<3x4x128xf32, #tpu.memory_space<vmem>>, vector<1x4x128xf32>
    %209 = vector.shape_cast %208 : vector<1x4x128xf32> to vector<4x128xf32>
    %210 = vector.extract_strided_slice %209 {offsets = [0, 0], sizes = [1, 32], strides = [1, 1]} : vector<4x128xf32> to vector<1x32xf32>
    %211 = vector.extract_strided_slice %209 {offsets = [1, 0], sizes = [1, 128], strides = [1, 1]} : vector<4x128xf32> to vector<1x128xf32>
    %212 = vector.extract_strided_slice %209 {offsets = [2, 0], sizes = [1, 32], strides = [1, 1]} : vector<4x128xf32> to vector<1x32xf32>
    %213 = vector.extract_strided_slice %209 {offsets = [3, 0], sizes = [1, 32], strides = [1, 1]} : vector<4x128xf32> to vector<1x32xf32>
    %c2_77 = arith.constant 2 : index
    %c0_78 = arith.constant 0 : index
    %c0_79 = arith.constant 0 : index
    %214 = vector.load %arg2[%c2_77, %c0_78, %c0_79] : memref<3x8x128xf32, #tpu.memory_space<vmem>>, vector<1x8x128xf32>
    %215 = vector.shape_cast %214 : vector<1x8x128xf32> to vector<8x128xf32>
    %216 = arith.truncf %184 : vector<8x32xf32> to vector<8x32xbf16>
    %c2_80 = arith.constant 2 : index
    %c0_81 = arith.constant 0 : index
    %c0_82 = arith.constant 0 : index
    %217 = vector.load %arg3[%c2_80, %c0_81, %c0_82] : memref<3x32x32xbf16, #tpu.memory_space<vmem>>, vector<1x32x32xbf16>
    %218 = vector.shape_cast %217 : vector<1x32x32xbf16> to vector<32x32xbf16>
    %cst_83 = arith.constant dense<0.000000e+00> : vector<8x32xf32>
    %219 = tpu.matmul %216, %218, %cst_83 {dimension_numbers = #tpu.dot_dimension_numbers<[1], [0], [0], [1], [0, 0, 1, 1], [], []>} : vector<8x32xbf16>, vector<32x32xbf16>, vector<8x32xf32> -> vector<8x32xf32>
    %220 = vector.broadcast %210 : vector<1x32xf32> to vector<8x32xf32>
    %221 = arith.addf %219, %220 : vector<8x32xf32>
    %cst_84 = arith.constant 0.000000e+00 : f32
    %222 = vector.broadcast %cst_84 : f32 to vector<8x32xf32>
    %223 = arith.maximumf %221, %222 : vector<8x32xf32>
    %224 = arith.truncf %223 : vector<8x32xf32> to vector<8x32xbf16>
    %c2_85 = arith.constant 2 : index
    %c0_86 = arith.constant 0 : index
    %c0_87 = arith.constant 0 : index
    %225 = vector.load %arg4[%c2_85, %c0_86, %c0_87] : memref<3x32x128xbf16, #tpu.memory_space<vmem>>, vector<1x32x128xbf16>
    %226 = vector.shape_cast %225 : vector<1x32x128xbf16> to vector<32x128xbf16>
    %cst_88 = arith.constant dense<0.000000e+00> : vector<8x128xf32>
    %227 = tpu.matmul %224, %226, %cst_88 {dimension_numbers = #tpu.dot_dimension_numbers<[1], [0], [0], [1], [0, 0, 1, 1], [], []>} : vector<8x32xbf16>, vector<32x128xbf16>, vector<8x128xf32> -> vector<8x128xf32>
    %228 = vector.broadcast %211 : vector<1x128xf32> to vector<8x128xf32>
    %229 = arith.addf %227, %228 : vector<8x128xf32>
    %c12_i32 = arith.constant 12 : i32
    %230 = vector.broadcast %c12_i32 : i32 to vector<8x128xi32>
    %231 = arith.cmpi slt, %1, %230 : vector<8x128xi32>
    %cst_89 = arith.constant -1.000000e+30 : f32
    %232 = vector.broadcast %cst_89 : f32 to vector<8x128xf32>
    %233 = arith.select %231, %229, %232 : vector<8x128xi1>, vector<8x128xf32>
    %cst_90 = arith.constant dense<0xFF800000> : vector<8xf32>
    %234 = vector.multi_reduction <maximumf>, %233, %cst_90 [1] : vector<8x128xf32> to vector<8xf32>
    %235 = vector.shape_cast %234 : vector<8xf32> to vector<8x1xf32>
    %236 = vector.broadcast %235 : vector<8x1xf32> to vector<8x128xf32>
    %237 = arith.subf %233, %236 : vector<8x128xf32>
    %238 = math.exp %237 : vector<8x128xf32>
    %cst_91 = arith.constant dense<0.000000e+00> : vector<8xf32>
    %239 = vector.multi_reduction <add>, %238, %cst_91 [1] : vector<8x128xf32> to vector<8xf32>
    %240 = vector.shape_cast %239 : vector<8xf32> to vector<8x1xf32>
    %241 = math.log %240 : vector<8x1xf32>
    %242 = vector.broadcast %241 : vector<8x1xf32> to vector<8x128xf32>
    %243 = arith.subf %237, %242 : vector<8x128xf32>
    %244 = vector.broadcast %240 : vector<8x1xf32> to vector<8x128xf32>
    %245 = arith.divf %238, %244 : vector<8x128xf32>
    %246 = arith.mulf %245, %243 : vector<8x128xf32>
    %cst_92 = arith.constant dense<0.000000e+00> : vector<8xf32>
    %247 = vector.multi_reduction <add>, %246, %cst_92 [1] : vector<8x128xf32> to vector<8xf32>
    %248 = vector.shape_cast %247 : vector<8xf32> to vector<8x1xf32>
    %cst_93 = arith.constant 0.000000e+00 : f32
    %249 = vector.broadcast %cst_93 : f32 to vector<8x1xf32>
    %250 = arith.subf %249, %248 : vector<8x1xf32>
    %251 = arith.addf %233, %215 : vector<8x128xf32>
    %252 = tpu.reduce_index %251 {axis = 1 : i32, kind = #tpu.reduction_kind<arg_max>} : vector<8x128xf32> -> vector<8xi32>
    %253 = vector.shape_cast %252 : vector<8xi32> to vector<8x1xi32>
    %254 = vector.broadcast %253 : vector<8x1xi32> to vector<8x128xi32>
    %255 = arith.cmpi eq, %1, %254 : vector<8x128xi32>
    %256 = arith.extui %255 : vector<8x128xi1> to vector<8x128xi32>
    %257 = arith.sitofp %256 : vector<8x128xi32> to vector<8x128xf32>
    %258 = arith.mulf %257, %243 : vector<8x128xf32>
    %cst_94 = arith.constant dense<0.000000e+00> : vector<8xf32>
    %259 = vector.multi_reduction <add>, %258, %cst_94 [1] : vector<8x128xf32> to vector<8xf32>
    %260 = vector.shape_cast %259 : vector<8xf32> to vector<8x1xf32>
    %261 = arith.truncf %257 : vector<8x128xf32> to vector<8x128xbf16>
    %c2_95 = arith.constant 2 : index
    %c0_96 = arith.constant 0 : index
    %c0_97 = arith.constant 0 : index
    %262 = vector.load %arg5[%c2_95, %c0_96, %c0_97] : memref<3x128x32xbf16, #tpu.memory_space<vmem>>, vector<1x128x32xbf16>
    %263 = vector.shape_cast %262 : vector<1x128x32xbf16> to vector<128x32xbf16>
    %cst_98 = arith.constant dense<0.000000e+00> : vector<8x32xf32>
    %264 = tpu.matmul %261, %263, %cst_98 {dimension_numbers = #tpu.dot_dimension_numbers<[1], [0], [0], [1], [0, 0, 1, 1], [], []>} : vector<8x128xbf16>, vector<128x32xbf16>, vector<8x32xf32> -> vector<8x32xf32>
    %cst_99 = arith.constant dense<0.000000e+00> : vector<8xf32>
    %265 = vector.multi_reduction <add>, %264, %cst_99 [1] : vector<8x32xf32> to vector<8xf32>
    %266 = vector.shape_cast %265 : vector<8xf32> to vector<8x1xf32>
    %cst_100 = arith.constant 3.200000e+01 : f32
    %267 = vector.broadcast %cst_100 : f32 to vector<8x1xf32>
    %268 = arith.divf %266, %267 : vector<8x1xf32>
    %269 = vector.broadcast %268 : vector<8x1xf32> to vector<8x32xf32>
    %270 = arith.subf %264, %269 : vector<8x32xf32>
    %271 = arith.mulf %270, %270 : vector<8x32xf32>
    %cst_101 = arith.constant dense<0.000000e+00> : vector<8xf32>
    %272 = vector.multi_reduction <add>, %271, %cst_101 [1] : vector<8x32xf32> to vector<8xf32>
    %273 = vector.shape_cast %272 : vector<8xf32> to vector<8x1xf32>
    %cst_102 = arith.constant 3.200000e+01 : f32
    %274 = vector.broadcast %cst_102 : f32 to vector<8x1xf32>
    %275 = arith.divf %273, %274 : vector<8x1xf32>
    %276 = vector.broadcast %268 : vector<8x1xf32> to vector<8x32xf32>
    %277 = arith.subf %264, %276 : vector<8x32xf32>
    %cst_103 = arith.constant 9.99999974E-6 : f32
    %278 = vector.broadcast %cst_103 : f32 to vector<8x1xf32>
    %279 = arith.addf %275, %278 : vector<8x1xf32>
    %280 = math.rsqrt %279 : vector<8x1xf32>
    %281 = vector.broadcast %280 : vector<8x1xf32> to vector<8x32xf32>
    %282 = arith.mulf %277, %281 : vector<8x32xf32>
    %283 = vector.broadcast %212 : vector<1x32xf32> to vector<8x32xf32>
    %284 = arith.mulf %282, %283 : vector<8x32xf32>
    %285 = vector.broadcast %213 : vector<1x32xf32> to vector<8x32xf32>
    %286 = arith.addf %284, %285 : vector<8x32xf32>
    %287 = arith.addf %184, %286 : vector<8x32xf32>
    %c0_i32_104 = arith.constant 0 : i32
    %288 = vector.broadcast %c0_i32_104 : i32 to vector<8x128xi32>
    %289 = arith.cmpi eq, %1, %288 : vector<8x128xi32>
    %290 = arith.sitofp %253 : vector<8x1xi32> to vector<8x1xf32>
    %c1_i32_105 = arith.constant 1 : i32
    %291 = vector.broadcast %c1_i32_105 : i32 to vector<8x128xi32>
    %292 = arith.cmpi eq, %1, %291 : vector<8x128xi32>
    %c2_i32_106 = arith.constant 2 : i32
    %293 = vector.broadcast %c2_i32_106 : i32 to vector<8x128xi32>
    %294 = arith.cmpi eq, %1, %293 : vector<8x128xi32>
    %cst_107 = arith.constant 0.000000e+00 : f32
    %295 = vector.shape_cast %250 : vector<8x1xf32> to vector<8x1xf32>
    %296 = vector.broadcast %295 : vector<8x1xf32> to vector<8x128xf32>
    %297 = vector.broadcast %cst_107 : f32 to vector<8x128xf32>
    %298 = arith.select %294, %296, %297 : vector<8x128xi1>, vector<8x128xf32>
    %299 = vector.shape_cast %260 : vector<8x1xf32> to vector<8x1xf32>
    %300 = vector.broadcast %299 : vector<8x1xf32> to vector<8x128xf32>
    %301 = arith.select %292, %300, %298 : vector<8x128xi1>, vector<8x128xf32>
    %302 = vector.shape_cast %290 : vector<8x1xf32> to vector<8x1xf32>
    %303 = vector.broadcast %302 : vector<8x1xf32> to vector<8x128xf32>
    %304 = arith.select %289, %303, %301 : vector<8x128xi1>, vector<8x128xf32>
    %c2_108 = arith.constant 2 : index
    %c0_109 = arith.constant 0 : index
    %c0_110 = arith.constant 0 : index
    %305 = vector.load %arg7[%c2_108, %c0_109, %c0_110] : memref<3x8x256xf32, #tpu.memory_space<vmem>>, vector<1x8x128xf32>
    %306 = vector.shape_cast %305 : vector<1x8x128xf32> to vector<8x128xf32>
    %307 = vector.shape_cast %233 : vector<8x128xf32> to vector<1x8x128xf32>
    tpu.vector_store %arg7[%c2_108, %c0_109, %c0_110], %307 {strides = array<i32>} : memref<3x8x256xf32, #tpu.memory_space<vmem>>, vector<1x8x128xf32>,
    %c2_111 = arith.constant 2 : index
    %c0_112 = arith.constant 0 : index
    %c128_113 = arith.constant 128 : index
    %308 = vector.load %arg7[%c2_111, %c0_112, %c128_113] : memref<3x8x256xf32, #tpu.memory_space<vmem>>, vector<1x8x128xf32>
    %309 = vector.shape_cast %308 : vector<1x8x128xf32> to vector<8x128xf32>
    %310 = vector.shape_cast %304 : vector<8x128xf32> to vector<1x8x128xf32>
    tpu.vector_store %arg7[%c2_111, %c0_112, %c128_113], %310 {strides = array<i32>} : memref<3x8x256xf32, #tpu.memory_space<vmem>>, vector<1x8x128xf32>,
    %c0_114 = arith.constant 0 : index
    %c0_115 = arith.constant 0 : index
    %311 = vector.load %arg8[%c0_114, %c0_115] : memref<8x32xf32, #tpu.memory_space<vmem>>, vector<8x32xf32>
    tpu.vector_store %arg8[%c0_114, %c0_115], %287 {strides = array<i32>} : memref<8x32xf32, #tpu.memory_space<vmem>>, vector<8x32xf32>,
    return
  }
  func.func @transform_0(%arg0: i32) -> (i32, i32) {
    %c0_i32 = arith.constant 0 : i32
    %c0_i32_0 = arith.constant 0 : i32
    return %arg0, %c0_i32 : i32, i32
  }
  func.func @transform_1(%arg0: i32) -> (i32, i32, i32) {
    %c0_i32 = arith.constant 0 : i32
    %c0_i32_0 = arith.constant 0 : i32
    %c0_i32_1 = arith.constant 0 : i32
    return %c0_i32, %arg0, %c0_i32_0 : i32, i32, i32
  }
  func.func @transform_2(%arg0: i32) -> (i32, i32, i32) {
    %c0_i32 = arith.constant 0 : i32
    %c0_i32_0 = arith.constant 0 : i32
    %c0_i32_1 = arith.constant 0 : i32
    %c0_i32_2 = arith.constant 0 : i32
    return %c0_i32, %c0_i32_0, %c0_i32_1 : i32, i32, i32
  }
  func.func @transform_3(%arg0: i32) -> (i32, i32, i32) {
    %c0_i32 = arith.constant 0 : i32
    %c0_i32_0 = arith.constant 0 : i32
    %c0_i32_1 = arith.constant 0 : i32
    %c0_i32_2 = arith.constant 0 : i32
    return %c0_i32, %c0_i32_0, %c0_i32_1 : i32, i32, i32
  }
  func.func @transform_4(%arg0: i32) -> (i32, i32, i32) {
    %c0_i32 = arith.constant 0 : i32
    %c0_i32_0 = arith.constant 0 : i32
    %c0_i32_1 = arith.constant 0 : i32
    %c0_i32_2 = arith.constant 0 : i32
    return %c0_i32, %c0_i32_0, %c0_i32_1 : i32, i32, i32
  }
  func.func @transform_5(%arg0: i32) -> (i32, i32, i32) {
    %c0_i32 = arith.constant 0 : i32
    %c0_i32_0 = arith.constant 0 : i32
    %c0_i32_1 = arith.constant 0 : i32
    %c0_i32_2 = arith.constant 0 : i32
    return %c0_i32, %c0_i32_0, %c0_i32_1 : i32, i32, i32
  }
  func.func @transform_6(%arg0: i32) -> (i32, i32, i32) {
    %c0_i32 = arith.constant 0 : i32
    %c0_i32_0 = arith.constant 0 : i32
    %c0_i32_1 = arith.constant 0 : i32
    return %c0_i32, %arg0, %c0_i32_0 : i32, i32, i32
  }
  func.func @transform_7(%arg0: i32) -> (i32, i32) {
    %c0_i32 = arith.constant 0 : i32
    %c0_i32_0 = arith.constant 0 : i32
    return %arg0, %c0_i32 : i32, i32
  }
}

</mosaic_0001>

<bundles_post_ra>
// kernel: tpu_custom_call.1
= control target key start
LH: loop header
LB: loop body
LE: loop exit
PB: predicated region body
PF: predicated region fallthrough
CT: control target
= control target key end

     0   :  { %13 = vsyncpa [#allocation3], 0  ;;  %v1325_v1 = vmov 0.0   ;;  %vm1326_vm0 = vmmov 0   ;;  %vm54_vm1 = vcmask 261120   ;;  %s1713_s0 = inlined_call_operand.vmem [shape: f32[8,32], index: 0, kind: input, shape index: {}]   ;;  %s1714_s1 = inlined_call_operand.vmem [shape: f32[3,8,128], index: 1, kind: input, shape index: {}]   ;;  %s1715_s2 = inlined_call_operand.vmem [shape: bf16[3,32,32], index: 2, kind: input, shape index: {}]   ;;  %s1716_s3 = inlined_call_operand.vmem [shape: bf16[3,32,128], index: 3, kind: input, shape index: {}]   ;;  %s1717_s4 = inlined_call_operand.vmem [shape: bf16[3,128,32], index: 4, kind: input, shape index: {}]   ;;  %s1718_s5 = inlined_call_operand.vmem [shape: f32[3,4,128], index: 5, kind: input, shape index: {}]   ;;  %s1719_s6 = inlined_call_operand.hbm [shape: f32[3,8,256], index: 6, kind: output, shape index: {0}]   ;;  %s1720_s7 = inlined_call_operand.hbm [shape: f32[8,32], index: 7, kind: output, shape index: {1}]  }
   0x1   :  { %v1221_v0 = vld [vmem:[%s1715_s2 + $0x8] sm:$0xff]   ;;  %1106 = vmatprep.subr.bf16.mxu1 %v1325_v1  ;;  %v1222_v2 = vld [vmem:[%s1715_s2] sm:$0xff]   ;;  %1122 = vmatprep.subr.bf16.mxu0 %v1325_v1 }
   0x2   :  { %1107 = vmatpush3.bf16.msra.mxu1 %v1221_v0  ;;  %1110 = vmatprep.mubr.msk.bf16.mxu1 %vm1326_vm0, %v1325_v1  ;;  %v1385_v3 = vld [vmem:[%s1713_s0] sm:$0xff]  ;;  %v1223_v5 = vld [vmem:[%s1716_s3 + $0x8] sm:$0xff]  }
   0x3   :  { %1108 = vmatprep.subr.bf16.mxu1 %v1325_v1  ;;  %1138 = vmatprep.mubr.msk.bf16.mxu0 %vm1326_vm0, %v1325_v1  ;;  %v33_v4 = vpack.c.bf16 %v1385_v3, %v1385_v3 }
   0x6   :  { %1109 = vmatpush3.bf16.msra.mxu1 %v1222_v2 }
   0x7   :  { %1114 = vmatprep.subr.bf16.mxu1 %v1325_v1 }
   0x9   :  { %1111 = vmatmul.mubr.msk.bf16.vlgmr.msra.gmra.mxu1 %vm54_vm1, %v33_v4 }
   0xa   :  { %1115 = vmatpush3.bf16.msra.mxu1 %v1223_v5  ;;  %1118 = vmatprep.mubr.msk.bf16.mxu1 %vm1326_vm0, %v1325_v1 }
   0xb   :  { %1116 = vmatprep.subr.bf16.mxu1 %v1325_v1 }
   0xc   :  { %14 = vsyncpa [#allocation5], 0  ;;  %v1224_v6 = vld [vmem:[%s1716_s3] sm:$0xff]   ;;  %v29_v7 = vlaneseq  ;;  %v1225_v19 = vld [vmem:[%s1717_s4 + $0x38] sm:$0xff]   ;;  %v1327_v39 = vmov 1.0|1.0  }
   0xd   :  { %v1412_v10 = vld [vmem:[%s1718_s5] sm:$0xf]  ;;  %1123 = vmatpush3.bf16.msra.mxu0 %v1225_v19  ;;  %v1226_v20 = vld [vmem:[%s1717_s4 + $0x30] sm:$0xff]   ;;  %v1227_v21 = vld [vmem:[%s1717_s4 + $0x28] sm:$0xff]   ;;  %s1329_s11 = smov [#allocation2]  }
   0xe   :  { %1117 = vmatpush3.bf16.msra.mxu1 %v1224_v6  ;;  %v1404_v8 = vshrl.u32 %v29_v7, 7  ;;  %1124 = vmatprep.subr.bf16.mxu0 %v1325_v1  ;;  %v1228_v22 = vld [vmem:[%s1717_s4 + $0x20] sm:$0xff]   ;;  %v1229_v23 = vld [vmem:[%s1717_s4 + $0x18] sm:$0xff]   ;;  %v1230_v24 = vld [vmem:[%s1717_s4 + $0x10] sm:$0xff]   ;;  %v1454_v28 = vand.u32 127, %v29_v7  ;;  %s933_s12 = sshll.u32 %s1329_s11, 4  ;;  %s934_s12 = int_to_ptr.vmem [resolvable:$true] %s933_s12 }
   0xf   :  { %1142 = vmatprep.subr.bf16.mxu1 %v1325_v1  ;;  %v1231_v25 = vld [vmem:[%s1717_s4 + $0x8] sm:$0xff]   ;;  %v1232_v26 = vld [vmem:[%s1717_s4] sm:$0xff]   ;;  %v1233_v50 = vld [vmem:[%s1715_s2 + $0x18] sm:$0xff]  }
  0x10   :  { %v1407_v9 = vsub.s32 0, %v1404_v8  ;;  %v1452_v27 = vsub.s32 1, %v1404_v8  ;;  %vm163_vm2 = vcmp.lt.s32.totalorder %v1454_v28, 6  ;;  %v32_v32 = vld [vmem:[%s1714_s1] sm:$0xff]  ;;  %v1234_v51 = vld [vmem:[%s1715_s2 + $0x10] sm:$0xff]   ;;  %v1488_v55 = vsub.s32 2, %v1404_v8 }
  0x11   :  { %1125 = vmatpush3.bf16.msra.mxu0 %v1226_v20  ;;  %v1491_v56 = vsub.s32 3, %v1404_v8  ;;  %v1235_v0 = vld [vmem:[%s1716_s3 + $0x18] sm:$0xff]   ;;  %v1516_v4 = vld [vmem:[%s1718_s5 + $0x4] sm:$0xf]  ;;  %v1242_v19 = vld [vmem:[%s1717_s4 + $0x50] sm:$0xff]   ;;  %vm464_vm5 = vcmp.lt.s32.totalorder %v1454_v28, 7 }
  0x12   :  { %v41_v11 = vrot.slane %v1412_v10, %v1407_v9  ;;  %1126 = vmatprep.subr.bf16.mxu0 %v1325_v1  ;;  %v107_v29 = vrot.slane %v1412_v10, %v1452_v27  ;;  %v312_v57 = vrot.slane %v1412_v10, %v1488_v55  ;;  %v342_v5 = vrot.slane %v1516_v4, %v1407_v9  ;;  %v1243_v20 = vld [vmem:[%s1717_s4 + $0x48] sm:$0xff]  }
  0x13   :  { %v317_v59 = vrot.slane %v1412_v10, %v1491_v56  ;;  %vm763_vm8 = vcmp.lt.s32.totalorder %v1454_v28, 12  ;;  %vm323_vm11 = vcmp.eq.s32.totalorder %v1454_v28, 2  ;;  %vm322_vm12 = vcmp.eq.s32.totalorder %v1454_v28, 1 }
  0x14   :  { %vm320_vm13 = vcmp.eq.s32.totalorder %v1454_v28, 0 }
  0x15   :  { %1127 = vmatpush3.bf16.msra.mxu0 %v1227_v21  ;;  %v1244_v21 = vld [vmem:[%s1717_s4 + $0x40] sm:$0xff]  }
  0x16   :  { %1128 = vmatprep.subr.bf16.mxu0 %v1325_v1 }
  0x19   :  { %1129 = vmatpush3.bf16.msra.mxu0 %v1228_v22  ;;  %v408_v22 = vrot.slane %v1516_v4, %v1452_v27 }
  0x1a   :  { %1130 = vmatprep.subr.bf16.mxu0 %v1325_v1 }
  0x1d   :  { %1131 = vmatpush3.bf16.msra.mxu0 %v1229_v23 }
  0x1e   :  { %1132 = vmatprep.subr.bf16.mxu0 %v1325_v1 }
  0x21   :  { %1133 = vmatpush3.bf16.msra.mxu0 %v1230_v24 }
  0x22   :  { %1134 = vmatprep.subr.bf16.mxu0 %v1325_v1 }
  0x25   :  { %1135 = vmatpush3.bf16.msra.mxu0 %v1231_v25  ;;  %v976_v25 = vld [vmem:[%s1714_s1 + $0x8] sm:$0xff] }
  0x26   :  { %1136 = vmatprep.subr.bf16.mxu0 %v1325_v1 }
  0x29   :  { %1137 = vmatpush3.bf16.msra.mxu0 %v1232_v26 }
  0x2a   :  { %1186 = vmatprep.subr.bf16.mxu0 %v1325_v1 }
  0xc9   :  { %v92_v12 = vpop.f32.mrf.mxu1 }
  0xca   :  { %v93_v13 = vadd.f32 %v92_v12, %v41_v11 }
  0xcb   :  { %v1112_v14 = vpop.f32.mrf.mxu1 }
  0xcc   :  { %v98_v15 = vmax.f32 %v93_v13, 0.0  ;;  %v1237_v14 = vld [vmem:[%s1717_s4 + $0x78] sm:$0xff]  }
  0xcd   :  { %v95_v16 = vpop.f32.mrf.mxu1 }
  0xce   :  { %v99_v17 = vpack.c.bf16 %v98_v15, %v98_v15  ;;  %v1238_v15 = vld [vmem:[%s1717_s4 + $0x70] sm:$0xff]   ;;  %v1239_v16 = vld [vmem:[%s1717_s4 + $0x68] sm:$0xff]  }
  0xcf   :  { %v1113_v18 = vpop.f32.mrf.mxu1 }
  0xd0   :  { %1119 = vmatmul.mubr.msk.bf16.vlgmr.msra.gmra.mxu1 %vm54_vm1, %v99_v17  ;;  %v1240_v17 = vld [vmem:[%s1717_s4 + $0x60] sm:$0xff]   ;;  %v1241_v18 = vld [vmem:[%s1717_s4 + $0x58] sm:$0xff]  }
  0xd1   :  { %1146 = vmatprep.mubr.msk.bf16.mxu1 %vm1326_vm0, %v1325_v1  ;;  %1143 = vmatpush3.bf16.msra.mxu1 %v1233_v50 }
  0xd2   :  { %1144 = vmatprep.subr.bf16.mxu1 %v1325_v1 }
  0xd5   :  { %1145 = vmatpush3.bf16.msra.mxu1 %v1234_v51 }
  0xd6   :  { %1150 = vmatprep.subr.bf16.mxu1 %v1325_v1 }
 0x190   :  { %v157_v30 = vpop.f32.mrf.mxu1 }
 0x191   :  { %v158_v31 = vadd.f32 %v157_v30, %v107_v29 }
 0x192   :  { %v1120_v33 = vpop.f32.mrf.mxu1 }
 0x193   :  { %v1462_v34 = vsel %vm163_vm2, %v158_v31, -1e+30 }
 0x194   :  { %327 = vst [vmem:[#allocation2] sm:$0xff] %v1462_v34  ;;  %v160_v35 = vpop.f32.mrf.mxu1  ;;  %v181_v36 = vadd.f32 %v1462_v34, %v32_v32 }
 0x196   :  { %182 = vmax.index.xlane.f32.xlu0 %v181_v36  ;;  %v1121_v37 = vpop.f32.mrf.mxu1 }
 0x21f   :  { %v1466_v38 = vpop.xlane.xlu0 %182 }
 0x220   :  { %vm184_vm3 = vcmp.eq.s32.totalorder %v1454_v28, %v1466_v38 }
 0x221   :  { %vm973_vm4 = vmpackc.low %vm184_vm3, %vm184_vm3 }
 0x222   :  { %1139 = vmatmul.mubr.msk.bf16.vlgmr.msra.gmra.mxu0 %vm973_vm4, %v1327_v39 }
 0x223   :  { %1190 = vmatprep.mubr.msk.bf16.mxu0 %vm1326_vm0, %v1325_v1 }
 0x2e2   :  { %v289_v40 = vpop.f32.mrf.mxu0 }
 0x2e3   :  { %v295_v41 = vsel %vm54_vm1, %v289_v40, 0.0 }
 0x2e4   :  { %296 = vadd.xlane.f32.xlu0 %v295_v41  ;;  %v1140_v42 = vpop.f32.mrf.mxu0 }
 0x2e6   :  { %v292_v43 = vpop.f32.mrf.mxu0 }
 0x2e8   :  { %v1141_v44 = vpop.f32.mrf.mxu0 }
 0x36d   :  { %v297_v45 = vpop.xlane.xlu0 %296 }
 0x36e   :  { %v299_v46 = vmul.f32 0.03125, %v297_v45 }
 0x370   :  { %v300_v47 = vsub.f32 %v289_v40, %v299_v46 }
 0x372   :  { %v301_v48 = vmul.f32 %v300_v47, %v300_v47 }
 0x374   :  { %v302_v49 = vsel %vm54_vm1, %v301_v48, 0.0  ;;  %v1246_v48 = vld [vmem:[%s1715_s2 + $0x20] sm:$0xff]  }
 0x375   :  { %303 = vadd.xlane.f32.xlu1 %v302_v49  ;;  %v1247_v49 = vld [vmem:[%s1716_s3 + $0x28] sm:$0xff]  }
 0x376   :  { %1187 = vmatpush3.bf16.msra.mxu0 %v1247_v49 }
 0x377   :  { %1188 = vmatprep.subr.bf16.mxu0 %v1325_v1 }
 0x3fe   :  { %v304_v52 = vpop.xlane.xlu1 %303 }
 0x3ff   :  { %v305_v53 = vmul.f32 0.03125, %v304_v52 }
 0x401   :  { %v306_v54 = vadd.f32 1e-05, %v305_v53  ;;  %v613_v53 = vrot.slane %v1516_v4, %v1488_v55 }
 0x403   :  { %1257 = vrsqrt.f32 %v306_v54 }
 0x410   :  { %v1258_v58 = vpop.eup %1257 }
 0x411   :  { %v308_v60 = vmul.f32 %v1258_v58, %v300_v47  ;;  %v1245_v47 = vld [vmem:[%s1715_s2 + $0x28] sm:$0xff]  }
 0x413   :  { %v313_v61 = vmul.f32 %v312_v57, %v308_v60  ;;  %v618_v57 = vrot.slane %v1516_v4, %v1491_v56 }
 0x415   :  { %v318_v62 = vadd.f32 %v317_v59, %v313_v61 }
 0x417   :  { %v1498_v63 = vadd.f32 %v318_v62, %v1385_v3  ;;  %v1236_v3 = vld [vmem:[%s1716_s3 + $0x10] sm:$0xff]  }
 0x419   :  { %v333_v2 = vpack.c.bf16 %v1498_v63, %v1498_v63 }
 0x41b   :  { %1147 = vmatmul.mubr.msk.bf16.vlgmr.msra.gmra.mxu1 %vm54_vm1, %v333_v2  ;;  %v1607_v2 = vld [vmem:[%s1718_s5 + $0x8] sm:$0xf] }
 0x41c   :  { %1151 = vmatpush3.bf16.msra.mxu1 %v1235_v0  ;;  %1154 = vmatprep.mubr.msk.bf16.mxu1 %vm1326_vm0, %v1325_v1  ;;  %v1248_v0 = vld [vmem:[%s1716_s3 + $0x20] sm:$0xff]  }
 0x41d   :  { %1152 = vmatprep.subr.bf16.mxu1 %v1325_v1  ;;  %1189 = vmatpush3.bf16.msra.mxu0 %v1248_v0 }
 0x41e   :  { %1194 = vmatprep.subr.bf16.mxu0 %v1325_v1 }
 0x420   :  { %1153 = vmatpush3.bf16.msra.mxu1 %v1236_v3 }
 0x421   :  { %1158 = vmatprep.subr.bf16.mxu1 %v1325_v1 }
 0x4db   :  { %v392_v6 = vpop.f32.mrf.mxu1 }
 0x4dc   :  { %v393_v7 = vadd.f32 %v392_v6, %v342_v5 }
 0x4dd   :  { %v1148_v8 = vpop.f32.mrf.mxu1 }
 0x4de   :  { %v398_v10 = vmax.f32 %v393_v7, 0.0 }
 0x4df   :  { %v395_v11 = vpop.f32.mrf.mxu1 }
 0x4e0   :  { %v399_v12 = vpack.c.bf16 %v398_v10, %v398_v10  ;;  %v1249_v11 = vld [vmem:[%s1717_s4 + $0xb8] sm:$0xff]  }
 0x4e1   :  { %v1149_v13 = vpop.f32.mrf.mxu1 }
 0x4e2   :  { %1155 = vmatmul.mubr.msk.bf16.vlgmr.msra.gmra.mxu1 %vm54_vm1, %v399_v12  ;;  %v1251_v12 = vld [vmem:[%s1717_s4 + $0xa8] sm:$0xff]   ;;  %v1252_v13 = vld [vmem:[%s1717_s4 + $0xa0] sm:$0xff]  }
 0x4e3   :  { %1174 = vmatprep.mubr.msk.bf16.mxu1 %vm1326_vm0, %v1325_v1  ;;  %1159 = vmatpush3.bf16.msra.mxu1 %v1237_v14  ;;  %v1253_v14 = vld [vmem:[%s1717_s4 + $0x98] sm:$0xff]  }
 0x4e4   :  { %1160 = vmatprep.subr.bf16.mxu1 %v1325_v1 }
 0x4e7   :  { %1161 = vmatpush3.bf16.msra.mxu1 %v1238_v15  ;;  %v1254_v15 = vld [vmem:[%s1717_s4 + $0x90] sm:$0xff]  }
 0x4e8   :  { %1162 = vmatprep.subr.bf16.mxu1 %v1325_v1 }
 0x4eb   :  { %1163 = vmatpush3.bf16.msra.mxu1 %v1239_v16  ;;  %v1255_v16 = vld [vmem:[%s1717_s4 + $0x88] sm:$0xff]  }
 0x4ec   :  { %1164 = vmatprep.subr.bf16.mxu1 %v1325_v1 }
 0x4ef   :  { %1165 = vmatpush3.bf16.msra.mxu1 %v1240_v17 }
 0x4f0   :  { %1166 = vmatprep.subr.bf16.mxu1 %v1325_v1 }
 0x4f3   :  { %1167 = vmatpush3.bf16.msra.mxu1 %v1241_v18 }
 0x4f4   :  { %1168 = vmatprep.subr.bf16.mxu1 %v1325_v1 }
 0x4f7   :  { %1169 = vmatpush3.bf16.msra.mxu1 %v1242_v19 }
 0x4f8   :  { %1170 = vmatprep.subr.bf16.mxu1 %v1325_v1 }
 0x4fb   :  { %1171 = vmatpush3.bf16.msra.mxu1 %v1243_v20  ;;  %v707_v20 = vrot.slane %v1607_v2, %v1452_v27  ;;  %v1256_v27 = vld [vmem:[%s1717_s4 + $0x80] sm:$0xff]  }
 0x4fc   :  { %1172 = vmatprep.subr.bf16.mxu1 %v1325_v1 }
 0x4ff   :  { %1173 = vmatpush3.bf16.msra.mxu1 %v1244_v21 }
 0x500   :  { %1178 = vmatprep.subr.bf16.mxu1 %v1325_v1 }
 0x5a2   :  { %v458_v23 = vpop.f32.mrf.mxu1 }
 0x5a3   :  { %v459_v24 = vadd.f32 %v458_v23, %v408_v22  ;;  %v1019_v23 = vld [vmem:[%s1714_s1 + $0x10] sm:$0xff]  ;;  %s1328_s1 = smov [#allocation4]  }
 0x5a4   :  { %v1156_v26 = vpop.f32.mrf.mxu1 }
 0x5a5   :  { %v1561_v29 = vsel %vm464_vm5, %v459_v24, -1e+30 }
 0x5a6   :  { %626 = vst [vmem:[#allocation2 + $0x10] sm:$0xff] %v1561_v29  ;;  %v461_v30 = vpop.f32.mrf.mxu1  ;;  %v482_v31 = vadd.f32 %v976_v25, %v1561_v29 }
 0x5a8   :  { %483 = vmax.index.xlane.f32.xlu1 %v482_v31  ;;  %v1157_v32 = vpop.f32.mrf.mxu1 }
 0x631   :  { %v1565_v33 = vpop.xlane.xlu1 %483 }
 0x632   :  { %vm485_vm6 = vcmp.eq.s32.totalorder %v1454_v28, %v1565_v33 }
 0x633   :  { %vm1016_vm7 = vmpackc.low %vm485_vm6, %vm485_vm6 }
 0x634   :  { %1175 = vmatmul.mubr.msk.bf16.vlgmr.msra.gmra.mxu1 %vm1016_vm7, %v1327_v39 }
 0x635   :  { %1182 = vmatprep.mubr.msk.bf16.mxu1 %vm1326_vm0, %v1325_v1  ;;  %1179 = vmatpush3.bf16.msra.mxu1 %v1245_v47  ;;  %v964_v47 = vsel %vm184_vm3, 1.0, %v1325_v1 }
 0x636   :  { %1180 = vmatprep.subr.bf16.mxu1 %v1325_v1 }
 0x639   :  { %1181 = vmatpush3.bf16.msra.mxu1 %v1246_v48 }
 0x6f4   :  { %v591_v35 = vpop.f32.mrf.mxu1 }
 0x6f5   :  { %v597_v36 = vsel %vm54_vm1, %v591_v35, 0.0 }
 0x6f6   :  { %598 = vadd.xlane.f32.xlu0 %v597_v36  ;;  %v1176_v37 = vpop.f32.mrf.mxu1 }
 0x6f8   :  { %v594_v40 = vpop.f32.mrf.mxu1 }
 0x6fa   :  { %v1177_v41 = vpop.f32.mrf.mxu1 }
 0x77f   :  { %v599_v42 = vpop.xlane.xlu0 %598 }
 0x780   :  { %v600_v43 = vmul.f32 0.03125, %v599_v42 }
 0x782   :  { %v601_v44 = vsub.f32 %v591_v35, %v600_v43 }
 0x784   :  { %v602_v45 = vmul.f32 %v601_v44, %v601_v44 }
 0x786   :  { %v603_v46 = vsel %vm54_vm1, %v602_v45, 0.0 }
 0x787   :  { %604 = vadd.xlane.f32.xlu1 %v603_v46 }
 0x78b   :  { %165 = vmax.xlane.f32.xlu1 %v1462_v34 }
 0x810   :  { %v605_v50 = vpop.xlane.xlu1 %604 }
 0x811   :  { %v606_v51 = vmul.f32 0.03125, %v605_v50 }
 0x813   :  { %v607_v52 = vadd.f32 1e-05, %v606_v51 }
 0x814   :  { %v166_v17 = vpop.xlane.xlu1 %165 }
 0x815   :  { %1259 = vrsqrt.f32 %v607_v52  ;;  %v167_v18 = vsub.f32 %v1462_v34, %v166_v17 }
 0x817   :  { %v168_v19 = vmul.f32 1.442695, %v167_v18 }
 0x819   :  { %1261 = vpow2.f32 %v168_v19 }
 0x822   :  { %v1260_v54 = vpop.eup %1259 }
 0x823   :  { %v609_v58 = vmul.f32 %v1260_v54, %v601_v44 }
 0x825   :  { %v614_v59 = vmul.f32 %v613_v53, %v609_v58 }
 0x826   :  { %v1262_v31 = vpop.eup %1261 }
 0x827   :  { %v619_v60 = vadd.f32 %v618_v57, %v614_v59 }
 0x829   :  { %v1595_v61 = vadd.f32 %v619_v60, %v1498_v63  ;;  %v641_v63 = vrot.slane %v1607_v2, %v1407_v9  ;;  %v1250_v9 = vld [vmem:[%s1717_s4 + $0xb0] sm:$0xff]   ;;  %s946_s4 = sshll.u32 %s1328_s1, 4  ;;  %s947_s4 = int_to_ptr.vmem [resolvable:$true] %s946_s4 }
 0x82a   :  { %s1281_s13 = scalar_lea.vmem %s947_s4, 128  ;;  %p1286_p1 = scmp.lt.s32.totalorder %s947_s4, %s947_s4 }
 0x82b   :  { %v632_v62 = vpack.c.bf16 %v1595_v61, %v1595_v61  ;;  %p1282_p0 = scmp.ne.s32.totalorder %s947_s4, %s1281_s13  ;;  %p1287_p2 = scmp.lt.s32.totalorder %s1281_s13, %s1281_s13 }
 0x82d   :  { %1183 = vmatmul.mubr.msk.bf16.vlgmr.msra.gmra.mxu1 %vm54_vm1, %v632_v62  ;;  %p1288_p3 = por %p1287_p2, %p1286_p1 }
 0x82f   :  { %p1289_p4 = pnand %p1288_p3, %p1282_p0 }
 0x8ed   :  { %v691_v3 = vpop.f32.mrf.mxu1 }
 0x8ee   :  { %v692_v4 = vadd.f32 %v691_v3, %v641_v63 }
 0x8ef   :  { %v1184_v5 = vpop.f32.mrf.mxu1 }
 0x8f0   :  { %v697_v6 = vmax.f32 %v692_v4, 0.0 }
 0x8f1   :  { %v694_v7 = vpop.f32.mrf.mxu1 }
 0x8f2   :  { %v698_v8 = vpack.c.bf16 %v697_v6, %v697_v6 }
 0x8f3   :  { %v1185_v10 = vpop.f32.mrf.mxu1 }
 0x8f4   :  { %1191 = vmatmul.mubr.msk.bf16.vlgmr.msra.gmra.mxu0 %vm54_vm1, %v698_v8 }
 0x8f5   :  { %1210 = vmatprep.mubr.msk.bf16.mxu0 %vm1326_vm0, %v1325_v1  ;;  %1195 = vmatpush3.bf16.msra.mxu0 %v1249_v11 }
 0x8f6   :  { %1196 = vmatprep.subr.bf16.mxu0 %v1325_v1 }
 0x8f9   :  { %1197 = vmatpush3.bf16.msra.mxu0 %v1250_v9 }
 0x8fa   :  { %1198 = vmatprep.subr.bf16.mxu0 %v1325_v1 }
 0x8fd   :  { %1199 = vmatpush3.bf16.msra.mxu0 %v1251_v12 }
 0x8fe   :  { %1200 = vmatprep.subr.bf16.mxu0 %v1325_v1 }
 0x901   :  { %1201 = vmatpush3.bf16.msra.mxu0 %v1252_v13 }
 0x902   :  { %1202 = vmatprep.subr.bf16.mxu0 %v1325_v1 }
 0x905   :  { %1203 = vmatpush3.bf16.msra.mxu0 %v1253_v14 }
 0x906   :  { %1204 = vmatprep.subr.bf16.mxu0 %v1325_v1 }
 0x909   :  { %1205 = vmatpush3.bf16.msra.mxu0 %v1254_v15 }
 0x90a   :  { %1206 = vmatprep.subr.bf16.mxu0 %v1325_v1 }
 0x90d   :  { %1207 = vmatpush3.bf16.msra.mxu0 %v1255_v16 }
 0x90e   :  { %1208 = vmatprep.subr.bf16.mxu0 %v1325_v1 }
 0x911   :  { %1209 = vmatpush3.bf16.msra.mxu0 %v1256_v27 }
 0x9b4   :  { %v757_v21 = vpop.f32.mrf.mxu0 }
 0x9b5   :  { %v758_v22 = vadd.f32 %v757_v21, %v707_v20 }
 0x9b6   :  { %v1192_v24 = vpop.f32.mrf.mxu0 }
 0x9b7   :  { %v764_v25 = vsel %vm763_vm8, %v758_v22, -1e+30 }
 0x9b8   :  { %925 = vst [vmem:[#allocation2 + $0x20] sm:$0xff] %v764_v25  ;;  %765 = vmax.xlane.f32.xlu1 %v764_v25  ;;  %v760_v26 = vpop.f32.mrf.mxu0  ;;  %v781_v30 = vadd.f32 %v1019_v23, %v764_v25 }
 0x9ba   :  { %782 = vmax.index.xlane.f32.xlu0 %v781_v30  ;;  %v1193_v34 = vpop.f32.mrf.mxu0 }
 0x9bb   :  { %v912_v34 = vrot.slane %v1607_v2, %v1488_v55 }
 0x9bc   :  { %170 = vadd.xlane.f32.xlu1 %v1262_v31 }
 0x9be   :  { %466 = vmax.xlane.f32.xlu0 %v1561_v29 }
 0xa41   :  { %v766_v32 = vpop.xlane.xlu1 %765 }
 0xa42   :  { %v767_v35 = vsub.f32 %v764_v25, %v766_v32  ;;  %v917_v32 = vrot.slane %v1607_v2, %v1491_v56 }
 0xa43   :  { %v1653_v36 = vpop.xlane.xlu0 %782 }
 0xa44   :  { %v768_v37 = vmul.f32 1.442695, %v767_v35  ;;  %vm784_vm9 = vcmp.eq.s32.totalorder %v1454_v28, %v1653_v36 }
 0xa45   :  { %vm1059_vm10 = vmpackc.low %vm784_vm9, %vm784_vm9  ;;  %v171_v40 = vpop.xlane.xlu1 %170  ;;  %v1034_v57 = vsel %vm784_vm9, 1.0, %v1325_v1 }
 0xa46   :  { %1263 = vpow2.f32 %v768_v37  ;;  %1211 = vmatmul.mubr.msk.bf16.vlgmr.msra.gmra.mxu0 %vm1059_vm10, %v1327_v39  ;;  %v621_v37 = vcvt.s32.f32 %v1565_v33 }
 0xa47   :  { %1265 = vlog2.f32 %v171_v40  ;;  %v467_v60 = vpop.xlane.xlu0 %466 }
 0xa48   :  { %1267 = vrcp.f32 %v171_v40  ;;  %v468_v62 = vsub.f32 %v1561_v29, %v467_v60 }
 0xa4a   :  { %v469_v0 = vmul.f32 1.442695, %v468_v62 }
 0xa53   :  { %v1264_v41 = vpop.eup %1263 }
 0xa54   :  { %v1266_v42 = vpop.eup %1265  ;;  %770 = vadd.xlane.f32.xlu1 %v1264_v41 }
 0xa55   :  { %v1268_v43 = vpop.eup %1267  ;;  %v173_v44 = vmul.f32 0.6931472, %v1266_v42 }
 0xa56   :  { %v176_v46 = vmul.f32 %v1268_v43, %v1262_v31 }
 0xa57   :  { %v174_v45 = vsub.f32 %v167_v18, %v173_v44  ;;  %v991_v18 = vsel %vm485_vm6, 1.0, %v1325_v1 }
 0xa59   :  { %v177_v48 = vmul.f32 %v176_v46, %v174_v45  ;;  %v187_v49 = vmul.f32 %v964_v47, %v174_v45  ;;  %v920_v46 = vcvt.s32.f32 %v1653_v36 }
 0xa5b   :  { %178 = vadd.xlane.f32.xlu1 %v177_v48 }
 0xadd   :  { %v771_v50 = vpop.xlane.xlu1 %770 }
 0xade   :  { %1269 = vlog2.f32 %v771_v50 }
 0xadf   :  { %1271 = vrcp.f32 %v771_v50 }
 0xae0   :  { %1273 = vpow2.f32 %v469_v0 }
 0xae4   :  { %v179_v24 = vpop.xlane.xlu1 %178 }
 0xae5   :  { %v180_v26 = vsub.f32 0.0, %v179_v24 }
 0xaeb   :  { %v1270_v39 = vpop.eup %1269 }
 0xaec   :  { %v1272_v51 = vpop.eup %1271  ;;  %v773_v52 = vmul.f32 0.6931472, %v1270_v39 }
 0xaed   :  { %v776_v54 = vmul.f32 %v1272_v51, %v1264_v41  ;;  %v1274_v6 = vpop.eup %1273  ;;  %v324_v41 = vsel %vm323_vm11, %v180_v26, 0.0 }
 0xaee   :  { %v774_v53 = vsub.f32 %v767_v35, %v773_v52  ;;  %v321_v35 = vcvt.s32.f32 %v1466_v38 }
 0xaf0   :  { %v777_v58 = vmul.f32 %v776_v54, %v774_v53  ;;  %v787_v59 = vmul.f32 %v1034_v57, %v774_v53 }
 0xaf2   :  { %778 = vadd.xlane.f32.xlu1 %v777_v58 }
 0xb06   :  { %v890_v63 = vpop.f32.mrf.mxu0 }
 0xb07   :  { %v896_v3 = vsel %vm54_vm1, %v890_v63, 0.0 }
 0xb08   :  { %897 = vadd.xlane.f32.xlu0 %v896_v3  ;;  %v1212_v4 = vpop.f32.mrf.mxu0 }
 0xb0a   :  { %v893_v5 = vpop.f32.mrf.mxu0 }
 0xb0c   :  { %471 = vadd.xlane.f32.xlu0 %v1274_v6  ;;  %v1213_v7 = vpop.f32.mrf.mxu0 }
 0xb7b   :  { %v779_v25 = vpop.xlane.xlu1 %778 }
 0xb7c   :  { %v780_v42 = vsub.f32 0.0, %v779_v25 }
 0xb7e   :  { %v921_v47 = vsel %vm323_vm11, %v780_v42, 0.0 }
 0xb91   :  { %v898_v8 = vpop.xlane.xlu0 %897 }
 0xb92   :  { %v899_v10 = vmul.f32 0.03125, %v898_v8 }
 0xb94   :  { %v900_v11 = vsub.f32 %v890_v63, %v899_v10 }
 0xb95   :  { %v472_v9 = vpop.xlane.xlu0 %471 }
 0xb96   :  { %1275 = vlog2.f32 %v472_v9  ;;  %v901_v12 = vmul.f32 %v900_v11, %v900_v11 }
 0xb97   :  { %1277 = vrcp.f32 %v472_v9 }
 0xb98   :  { %v902_v29 = vsel %vm54_vm1, %v901_v12, 0.0 }
 0xb99   :  { %903 = vadd.xlane.f32.xlu0 %v902_v29 }
 0xba3   :  { %v1276_v13 = vpop.eup %1275 }
 0xba4   :  { %v1278_v14 = vpop.eup %1277  ;;  %v474_v15 = vmul.f32 0.6931472, %v1276_v13 }
 0xba5   :  { %v477_v17 = vmul.f32 %v1278_v14, %v1274_v6 }
 0xba6   :  { %v475_v16 = vsub.f32 %v468_v62, %v474_v15 }
 0xba8   :  { %v488_v19 = vmul.f32 %v991_v18, %v475_v16  ;;  %v478_v20 = vmul.f32 %v477_v17, %v475_v16 }
 0xbaa   :  { %489 = vadd.xlane.f32.xlu1 %v488_v19  ;;  %479 = vadd.xlane.f32.xlu0 %v478_v20 }
 0xbae   :  { %188 = vadd.xlane.f32.xlu0 %v187_v49 }
 0xbb2   :  { %788 = vadd.xlane.f32.xlu0 %v787_v59 }
 0xc22   :  { %v904_v21 = vpop.xlane.xlu0 %903 }
 0xc23   :  { %v905_v22 = vmul.f32 0.03125, %v904_v21 }
 0xc25   :  { %v906_v23 = vadd.f32 1e-05, %v905_v22 }
 0xc27   :  { %1279 = vrsqrt.f32 %v906_v23 }
 0xc33   :  { %v480_v30 = vpop.xlane.xlu0 %479  ;;  %v490_v40 = vpop.xlane.xlu1 %489 }
 0xc34   :  { %v1280_v31 = vpop.eup %1279  ;;  %v481_v1 = vsub.f32 0.0, %v480_v30 }
 0xc35   :  { %v908_v27 = vmul.f32 %v1280_v31, %v900_v11 }
 0xc36   :  { %v622_v55 = vsel %vm323_vm11, %v481_v1, 0.0 }
 0xc37   :  { %v623_v43 = vsel %vm322_vm12, %v490_v40, %v622_v55  ;;  %v189_v44 = vpop.xlane.xlu0 %188  ;;  %v913_v45 = vmul.f32 %v912_v34, %v908_v27 }
 0xc38   :  { %v624_v56 = vsel %vm320_vm13, %v621_v37, %v623_v43  ;;  %v325_v38 = vsel %vm322_vm12, %v189_v44, %v324_v41 }
 0xc39   :  { %627 = vst [vmem:[#allocation2 + $0x18] sm:$0xff] %v624_v56  ;;  %v326_v33 = vsel %vm320_vm13, %v321_v35, %v325_v38  ;;  %v918_v2 = vadd.f32 %v917_v32, %v913_v45 }
 0xc3a   :  { %328 = vst [vmem:[#allocation2 + $0x8] sm:$0xff] %v326_v33 }
 0xc3b   :  { %v789_v48 = vpop.xlane.xlu0 %788  ;;  %v919_v49 = vadd.f32 %v918_v2, %v1595_v61 }
 0xc3c   :  { %v922_v50 = vsel %vm322_vm12, %v789_v48, %v921_v47 }
 0xc3d   :  { %v923_v39 = vsel %vm320_vm13, %v920_v46, %v922_v50  ;;  %927 = vst.msk [vmem:[#allocation4] sm:$0xff] %vm54_vm1, %v919_v49 }
 0xc3e   :  { %926 = vst [vmem:[#allocation2 + $0x28] sm:$0xff] %v923_v39 }
 0xc3f   :  { %1292 = shalt.err (!%p1289_p4)
}
 0xc40   :  { %949 = dma.vmem_to_hbm [thread:$0]  %s947_s4, 128, %s1720_s7, [#allocation5]  }
 0xc41   :  { %s1301_s2 = scalar_lea.vmem %s934_s12, 768  ;;  %p1306_p6 = scmp.lt.s32.totalorder %s934_s12, %s934_s12 }
 0xc42   :  { %p1302_p5 = scmp.ne.s32.totalorder %s934_s12, %s1301_s2  ;;  %p1307_p7 = scmp.lt.s32.totalorder %s1301_s2, %s1301_s2 }
 0xc44   :  { %p1308_p8 = por %p1307_p7, %p1306_p6 }
 0xc46   :  { %p1309_p9 = pnand %p1308_p8, %p1302_p5 }
 0xc48   :  { %1312 = shalt.err (!%p1309_p9)
}
 0xc49   :  { %s1330_s16 = smov 256   ;;  %s1331_s17 = smov 16  }
 0xc4a   :  { %939 = dma.vmem_to_hbm [thread:$0]  %s934_s12, 768, %s1719_s6, [#allocation3], %s1330_s16, %s1330_s16, %s1331_s17  }
 0xc4b   :  { %1321 = dma.done.wait [#allocation3], 768  }
 0xc4c   :  { %1322 = vsyncadd [#allocation3], 4294966528 }
 0xc4d   :  { %1323 = dma.done.wait [#allocation5], 128  }
 0xc4e   :  { %1324 = vsyncadd [#allocation5], 4294967168 }
 0xc4f   :  { %956 = vsyncpa [#allocation3], 1 }
 0xc50   :  { %957 = vsyncpa [#allocation5], 1 }

</bundles_post_ra>
